<compile_context>
chip_gen: v7x
topology: tpu7x:2x2x1
jax: 0.10.0
libtpu: 0.0.40
codegen_flags: <defaults>
</compile_context>

<pallas_src>
import functools

import jax
import jax.numpy as jnp
from jax.experimental import pallas as pl
from jax.experimental.pallas import tpu as pltpu


class BaseModelConfig:
    """Mirror of BaseModel.__init__ (no tensors, just config)."""

    def __init__(self, context_size: int = 5, len_traj_pred: int = 5,
                 learn_angle: bool = True) -> None:
        self.context_size = context_size
        self.learn_angle = learn_angle
        self.len_trajectory_pred = len_traj_pred
        self.num_action_params = 4 if learn_angle else 2


# ---------------------------------------------------------------------------
# VMEM budget (generation aware).
# ---------------------------------------------------------------------------
def _vmem_budget():
    """(physical VMEM bytes, per-input-tile byte target)."""
    try:
        cap = int(pltpu.get_tpu_info().vmem_capacity_bytes)
    except Exception:  # not on TPU / API unavailable -> conservative (v7x)
        cap = 64 << 20
    # ~1-4 MiB tiles already reach 85%+ of the HBM roofline (measured, v6e);
    # bigger double-buffered tiles buy nothing and eat v7x's 64 MiB VMEM.
    target = min(4 << 20, max(512 << 10, cap // 16))
    return cap, target


def _largest_aligned_divisor(n: int, align: int, cap: int) -> int:
    """Largest multiple of `align` that divides n and is <= cap (0 if none)."""
    best = 0
    d = align
    limit = min(n, cap)
    while d <= limit:
        if n % d == 0:
            best = d
        d += align
    return best


# ---------------------------------------------------------------------------
# Kernels: NCHW path — rows = B*C on sublanes, HW on lanes, lane-axis reduce.
# ---------------------------------------------------------------------------
def _gap_rows_single_kernel(z_ref, o_ref, *, inv_hw: float):
    """z_ref: (TR, HW); o_ref: (TR, 1). Single reduction tile, no scratch."""
    s = jnp.sum(z_ref[...], axis=1, keepdims=True, dtype=jnp.float32)
    o_ref[...] = (s * inv_hw).astype(o_ref.dtype)


def _gap_rows_tiled_kernel(z_ref, o_ref, acc_ref, *, inv_hw: float):
    """z_ref: (TR, THW); o_ref: (TR, 1); acc_ref: (TR, 1) f32 scratch."""
    k = pl.program_id(1)  # reduction axis (last)

    @pl.when(k == 0)
    def _init():
        acc_ref[...] = jnp.zeros_like(acc_ref)

    acc_ref[...] += jnp.sum(z_ref[...], axis=1, keepdims=True, dtype=jnp.float32)

    @pl.when(k == pl.num_programs(1) - 1)
    def _finalize():
        o_ref[...] = (acc_ref[...] * inv_hw).astype(o_ref.dtype)


def _gap_rows(z2: jax.Array, hw_true: int) -> jax.Array:
    """Mean over axis 1 of (R, HW) -> (R, 1). Any HW zero-padding is sum-neutral."""
    R, HW = z2.shape
    itemsize = jnp.dtype(z2.dtype).itemsize
    cap, target = _vmem_budget()
    inv_hw = 1.0 / float(hw_true)

    # --- reduction (lane) tile: must cover HW exactly. Ragged/OOB blocks on the
    # reduction axis would sum unspecified padding, so never cdiv here.
    if HW * 8 * itemsize <= target:
        thw = HW                                  # single reduction tile (common)
    else:
        cap_hw = max(128, target // (8 * itemsize))
        thw = _largest_aligned_divisor(HW, 128, cap_hw)
        if thw == 0:
            # Rare corner: huge HW with no lane-aligned divisor — zero-pad (zeros
            # are sum-neutral; we still divide by the true HW).
            padded = pl.cdiv(HW, 128) * 128
            z2 = jnp.pad(z2, ((0, 0), (0, padded - HW)))
            HW = padded
            thw = _largest_aligned_divisor(HW, 128, cap_hw)

    # --- row (sublane) tile: NOT the reduction axis, so a ragged last block via
    # cdiv is safe (OOB rows only pollute output rows that are dropped).
    if R <= 8:
        tr = R
    else:
        tr = min(R, max(8, target // max(1, thw * itemsize)))
        tr = max(8, (tr // 8) * 8)
    grid_r = pl.cdiv(R, tr)

    out_shape = jax.ShapeDtypeStruct((R, 1), z2.dtype)
    in_bytes = tr * thw * itemsize
    out_bytes = tr * itemsize
    vmem_limit = int(min(cap, max(4 << 20,
                                  2 * in_bytes + 2 * out_bytes + tr * 4 + (2 << 20))))

    if thw == HW:
        # Fast path: one reduction tile -> no scratch, no init/finalize.
        kernel = functools.partial(_gap_rows_single_kernel, inv_hw=inv_hw)
        return pl.pallas_call(
            kernel,
            out_shape=out_shape,
            grid=(grid_r,),
            in_specs=[pl.BlockSpec((tr, HW), lambda i: (i, 0))],
            out_specs=pl.BlockSpec((tr, 1), lambda i: (i, 0)),
            compiler_params=pltpu.CompilerParams(
                dimension_semantics=("parallel",),
                vmem_limit_bytes=vmem_limit,
            ),
        )(z2)

    grid_hw = HW // thw
    kernel = functools.partial(_gap_rows_tiled_kernel, inv_hw=inv_hw)
    return pl.pallas_call(
        kernel,
        out_shape=out_shape,
        grid=(grid_r, grid_hw),
        in_specs=[pl.BlockSpec((tr, thw), lambda i, k: (i, k))],
        out_specs=pl.BlockSpec((tr, 1), lambda i, k: (i, 0)),
        scratch_shapes=[pltpu.VMEM((tr, 1), jnp.float32)],
        compiler_params=pltpu.CompilerParams(
            dimension_semantics=("parallel", "arbitrary"),
            vmem_limit_bytes=vmem_limit,
        ),
    )(z2)


# ---------------------------------------------------------------------------
# Kernels: NHWC path — C lane-dense, sublane-axis reduction over HW.
# ---------------------------------------------------------------------------
def _gap_bhwc_single_kernel(z_ref, o_ref, *, inv_hw: float):
    """z_ref: (TB, HW, TC); o_ref: (TB, TC). Single reduction tile, no scratch."""
    s = jnp.sum(z_ref[...], axis=1, dtype=jnp.float32)
    o_ref[...] = (s * inv_hw).astype(o_ref.dtype)


def _gap_bhwc_tiled_kernel(z_ref, o_ref, acc_ref, *, inv_hw: float):
    """z_ref: (TB, THW, TC); o_ref: (TB, TC); acc_ref: (TB, TC) f32 scratch."""
    k = pl.program_id(2)  # reduction axis (last)

    @pl.when(k == 0)
    def _init():
        acc_ref[...] = jnp.zeros_like(acc_ref)

    acc_ref[...] += jnp.sum(z_ref[...], axis=1, dtype=jnp.float32)

    @pl.when(k == pl.num_programs(2) - 1)
    def _finalize():
        o_ref[...] = (acc_ref[...] * inv_hw).astype(o_ref.dtype)


def _gap_bhwc(z3: jax.Array, hw_true: int) -> jax.Array:
    """Mean over axis 1 of (B, HW, C) -> (B, C)."""
    B, HW, C = z3.shape
    itemsize = jnp.dtype(z3.dtype).itemsize
    cap, target = _vmem_budget()
    inv_hw = 1.0 / float(hw_true)

    # Channel (lane) tile: split big C so v7x's second TensorCore gets work via a
    # second "parallel" grid axis even when the batch fits one tile.
    tc = 256 if (C >= 512 and C % 256 == 0) else C

    # Spatial (sublane) tile: the reduction axis — cover HW exactly.
    if HW * 8 * tc * itemsize <= target or HW <= 8:
        thw = HW
    else:
        cap_hw = max(8, target // max(1, 8 * tc * itemsize))
        thw = _largest_aligned_divisor(HW, 8, cap_hw)
        if thw == 0:
            padded = pl.cdiv(HW, 8) * 8
            z3 = jnp.pad(z3, ((0, 0), (0, padded - HW), (0, 0)))
            HW = padded
            thw = _largest_aligned_divisor(HW, 8, cap_hw)

    # Batch tile: non-reduction; second-to-last dim of the OUTPUT block, so it
    # must be a multiple of 8 (ragged last block via cdiv) or the full batch.
    if B <= 8:
        tb = B
    else:
        tb = min(B, max(8, target // max(1, thw * tc * itemsize)))
        tb = max(8, (tb // 8) * 8)
    grid_b = pl.cdiv(B, tb)
    grid_c = C // tc

    out_shape = jax.ShapeDtypeStruct((B, C), z3.dtype)
    in_bytes = tb * thw * tc * itemsize
    out_bytes = tb * tc * itemsize
    vmem_limit = int(min(cap, max(4 << 20,
                                  2 * in_bytes + 2 * out_bytes + tb * tc * 4 + (2 << 20))))

    if thw == HW:
        kernel = functools.partial(_gap_bhwc_single_kernel, inv_hw=inv_hw)
        return pl.pallas_call(
            kernel,
            out_shape=out_shape,
            grid=(grid_b, grid_c),
            in_specs=[pl.BlockSpec((tb, HW, tc), lambda i, j: (i, 0, j))],
            out_specs=pl.BlockSpec((tb, tc), lambda i, j: (i, j)),
            compiler_params=pltpu.CompilerParams(
                dimension_semantics=("parallel", "parallel"),
                vmem_limit_bytes=vmem_limit,
            ),
        )(z3)

    grid_hw = HW // thw
    kernel = functools.partial(_gap_bhwc_tiled_kernel, inv_hw=inv_hw)
    return pl.pallas_call(
        kernel,
        out_shape=out_shape,
        grid=(grid_b, grid_c, grid_hw),
        in_specs=[pl.BlockSpec((tb, thw, tc), lambda i, j, k: (i, k, j))],
        out_specs=pl.BlockSpec((tb, tc), lambda i, j, k: (i, j)),
        scratch_shapes=[pltpu.VMEM((tb, tc), jnp.float32)],
        compiler_params=pltpu.CompilerParams(
            dimension_semantics=("parallel", "parallel", "arbitrary"),
            vmem_limit_bytes=vmem_limit,
        ),
    )(z3)


# ---------------------------------------------------------------------------
# Public wrapper: BaseModel.flatten equivalent.
# ---------------------------------------------------------------------------
def base_model_flatten(z: jax.Array, data_format: str = "NCHW") -> jax.Array:
    """adaptive_avg_pool2d(z, (1, 1)) + flatten -> (B, C), same dtype as z."""
    if data_format == "NCHW":
        B, C, H, W = z.shape
        HW = H * W
        if HW == 1:
            return z.reshape(B, C)
        # Free row-major reshape (no HBM traffic): rows = B*C on sublanes, HW on
        # lanes; the reduction runs over lanes (XLU).  No transpose needed, and
        # tiny C is handled naturally (C never touches the lane axis here).
        pooled = _gap_rows(z.reshape(B * C, HW), HW)      # (B*C, 1)
        return pooled.reshape(B, C)
    elif data_format == "NHWC":
        B, H, W, C = z.shape
        HW = H * W
        if HW == 1:
            return z.reshape(B, C)
        if C < 128:
            # Lane-dense-C kernel would mask >~75% of the lanes; a Pallas kernel
            # is pure overhead for such tiny feature maps — let XLA handle it.
            return jnp.mean(z, axis=(1, 2))
        return _gap_bhwc(z.reshape(B, HW, C), HW)         # no transpose
    raise ValueError(f"unsupported data_format: {data_format}")


def base_model_forward(cfg: BaseModelConfig, obs_img: jax.Array,
                       goal_img: jax.Array):
    # TODO(synk): BaseModel.forward raises NotImplementedError in the reference
    # module; no forward semantics exist to translate.
    raise NotImplementedError


if __name__ == "__main__":
    cfg = BaseModelConfig(context_size=5, len_traj_pred=5, learn_angle=True)

    key = jax.random.PRNGKey(0)
    k_obs, k_goal, k_nhwc = jax.random.split(key, 3)

    # Small NCHW shapes (PyTorch layout) consistent with a feature map fed to
    # flatten().  Exercises the transpose-free (B*C, HW) lane-reduction kernel.
    obs_feat = jax.random.normal(k_obs, (2, 4, 16, 16), dtype=jnp.float32)
    goal_feat = jax.random.normal(k_goal, (2, 4, 16, 16), dtype=jnp.float32)

    obs_flat = base_model_flatten(obs_feat, "NCHW")
    goal_flat = base_model_flatten(goal_feat, "NCHW")

    # Also exercise the NHWC lane-dense-C kernel (native-layout producers).
    nhwc_feat = jax.random.normal(k_nhwc, (2, 8, 8, 128), dtype=jnp.float32)
    nhwc_flat = base_model_flatten(nhwc_feat, "NHWC")

    jax.block_until_ready((obs_flat, goal_flat, nhwc_flat))

    # Correctness checks against the pure-JAX reference of adaptive_avg_pool2d.
    ref_obs = jnp.mean(obs_feat, axis=(2, 3))
    ref_goal = jnp.mean(goal_feat, axis=(2, 3))
    ref_nhwc = jnp.mean(nhwc_feat, axis=(1, 2))
    assert obs_flat.shape == (2, 4) and goal_flat.shape == (2, 4)
    assert nhwc_flat.shape == (2, 128)
    assert jnp.allclose(obs_flat, ref_obs, atol=1e-5, rtol=1e-5)
    assert jnp.allclose(goal_flat, ref_goal, atol=1e-5, rtol=1e-5)
    assert jnp.allclose(nhwc_flat, ref_nhwc, atol=1e-5, rtol=1e-5)

    print("KERNEL_OK")
</pallas_src>

<mosaic_0001>
module attributes {stable_mosaic.version = 11 : i64} {
  func.func @_gap_rows_single_kernel(%arg0: i32, %arg1: memref<8x256xf32, #tpu.memory_space<vmem>>, %arg2: memref<8x1xf32, #tpu.memory_space<vmem>>) attributes {dimension_semantics = [#tpu.dimension_semantics<parallel>], iteration_bounds = array<i64: 1>, scalar_prefetch = 0 : i64, scratch_operands = 0 : i64, tpu.core_type = #tpu.core_type<tc>, window_params = [{transform_indices = @transform_0, window_bounds = array<i64: 8, 256>}, {transform_indices = @transform_1, window_bounds = array<i64: 8, 1>}]} {
    %c0 = arith.constant 0 : index
    %c0_0 = arith.constant 0 : index
    %0 = vector.load %arg1[%c0, %c0_0] : memref<8x256xf32, #tpu.memory_space<vmem>>, vector<8x256xf32>
    %cst = arith.constant dense<0.000000e+00> : vector<8xf32>
    %1 = vector.multi_reduction <add>, %0, %cst [1] : vector<8x256xf32> to vector<8xf32>
    %2 = vector.shape_cast %1 : vector<8xf32> to vector<8x1xf32>
    %cst_1 = arith.constant 3.906250e-03 : f32
    %3 = vector.broadcast %cst_1 : f32 to vector<8x1xf32>
    %4 = arith.mulf %2, %3 : vector<8x1xf32>
    %c0_2 = arith.constant 0 : index
    %c0_3 = arith.constant 0 : index
    %5 = vector.load %arg2[%c0_2, %c0_3] : memref<8x1xf32, #tpu.memory_space<vmem>>, vector<8x1xf32>
    tpu.vector_store %arg2[%c0_2, %c0_3], %4 {strides = array<i32>} : memref<8x1xf32, #tpu.memory_space<vmem>>, vector<8x1xf32>,
    return
  }
  func.func @transform_0(%arg0: i32) -> (i32, i32) {
    %c0_i32 = arith.constant 0 : i32
    %c0_i32_0 = arith.constant 0 : i32
    return %arg0, %c0_i32 : i32, i32
  }
  func.func @transform_1(%arg0: i32) -> (i32, i32) {
    %c0_i32 = arith.constant 0 : i32
    %c0_i32_0 = arith.constant 0 : i32
    return %arg0, %c0_i32 : i32, i32
  }
}

</mosaic_0001>

<bundles_post_ra>
// kernel: tpu_custom_call.1
= control target key start
LH: loop header
LB: loop body
LE: loop exit
PB: predicated region body
PF: predicated region fallthrough
CT: control target
= control target key end

     0   :  { %6 = vsyncpa [#allocation3], 0  ;;  %s58_s6 = smov [#allocation2]   ;;  %s84_s0 = inlined_call_operand.hbm [shape: f32[8,256], index: 0, kind: input, shape index: {}]   ;;  %s85_s1 = inlined_call_operand.vmem [shape: f32[8,1], index: 1, kind: output, shape index: {}]  }
   0x1   :  { %s13_s7 = sshll.u32 %s58_s6, 4  ;;  %s34_s10 = scalar_lea.hbm %s84_s0, 256  ;;  %s14_s7 = int_to_ptr.vmem [resolvable:$true] %s13_s7 }
   0x2   :  { %p35_p0 = scmp.ne.s32.totalorder %s84_s0, %s34_s10  ;;  %p38_p1 = scmp.lt.u32.totalorder %s34_s10, %s84_s0 }
   0x4   :  { %p40_p2 = pnand %p38_p1, %p35_p0 }
   0x6   :  { %43 = shalt.err (!%p40_p2)
}
   0x7   :  { %s44_s15 = scalar_lea.vmem %s14_s7, 256  ;;  %p49_p4 = scmp.lt.s32.totalorder %s14_s7, %s14_s7 }
   0x8   :  { %p45_p3 = scmp.ne.s32.totalorder %s14_s7, %s44_s15  ;;  %p50_p5 = scmp.lt.s32.totalorder %s44_s15, %s44_s15 }
   0xa   :  { %p51_p6 = por %p50_p5, %p49_p4 }
   0xc   :  { %p52_p7 = pnand %p51_p6, %p45_p3 }
   0xe   :  { %55 = shalt.err (!%p52_p7)
}
   0xf   :  { %16 = dma.hbm_to_vmem [thread:$0]  %s84_s0, 256, %s14_s7, [#allocation3]  }
  0x10   :  { %56 = dma.done.wait [#allocation3], 256  }
  0x11   :  { %57 = vsyncadd [#allocation3], 4294967040  ;;  %v20_v0 = vld [vmem:[#allocation2] sm:$0xff]  ;;  %v21_v1 = vld [vmem:[#allocation2 + $0x8] sm:$0xff]  ;;  %vm26_vm0 = vcmask 7168  }
  0x12   :  { %v22_v2 = vadd.f32 %v21_v1, %v20_v0 }
  0x14   :  { %23 = vadd.xlane.f32.xlu0 %v22_v2 }
  0xa1   :  { %v24_v3 = vpop.xlane.xlu0 %23 }
  0xa2   :  { %v25_v4 = vmul.f32 0.00390625, %v24_v3 }
  0xa4   :  { %27 = vst.msk [vmem:[%s85_s1] sm:$0xff] %vm26_vm0, %v25_v4 }
  0xa5   :  { %32 = vsyncpa [#allocation3], 1 }

</bundles_post_ra>
